<compile_context>
chip_gen: v6e
topology: v6e:2x2x1
jax: 0.10.0
libtpu: 0.0.40
codegen_flags: <defaults>
</compile_context>

<pallas_src>
import math

import jax
import jax.numpy as jnp
from jax.experimental import pallas as pl
from jax.experimental.pallas import tpu as pltpu

NEURONS = 128  # hidden width of Net_ANN_6_no_BN


def _round_up(x, m):
    return ((x + m - 1) // m) * m


def _mlp6_kernel(x_ref, w1, b1, w2, b2, w3, b3, w4, b4, w5, b5, w6, b6, o_ref):
    # Layer 1: (TB, n_in) @ (n_in, 128) -> f32 accumulate, bias, ReLU, carry bf16.
    h = jnp.dot(x_ref[...], w1[...], preferred_element_type=jnp.float32) + b1[...]
    h = jnp.maximum(h, 0.0).astype(jnp.bfloat16)
    # Layers 2-5: (TB, 128) @ (128, 128). Python loop unrolls at trace time.
    for w, b in ((w2, b2), (w3, b3), (w4, b4), (w5, b5)):
        h = jnp.dot(h, w[...], preferred_element_type=jnp.float32) + b[...]
        h = jnp.maximum(h, 0.0).astype(jnp.bfloat16)
    # Final layer: (TB, 128) @ (128, n_out_pad), no activation. Lane-dense store.
    out = jnp.dot(h, w6[...], preferred_element_type=jnp.float32) + b6[...]
    o_ref[...] = out.astype(o_ref.dtype)


def prepare_params(weights, biases):
    """One-time preprocessing (hoisted out of the forward path).

    weights: [w1..w6] in PyTorch nn.Linear convention (out, in), float32
    biases : [b1..b6], float32
    Returns kernel-ready arrays: weights transposed to (in, out) in bf16,
    biases as (1, N) f32 rows, final layer zero-padded to a lane-dense 128-wide
    output.
    """
    w1, w2, w3, w4, w5, w6 = weights
    b1, b2, b3, b4, b5, b6 = biases
    n_out = w6.shape[0]
    n_out_pad = max(128, _round_up(n_out, 128))

    def wt(w):
        return jnp.asarray(w, jnp.float32).T.astype(jnp.bfloat16)

    def br(b):
        return jnp.asarray(b, jnp.float32).reshape(1, -1)

    w6t = jnp.asarray(w6, jnp.float32).T                     # (neurons, n_out)
    w6p = jnp.zeros((w6t.shape[0], n_out_pad), jnp.float32).at[:, :n_out].set(w6t)
    b6p = jnp.zeros((1, n_out_pad), jnp.float32).at[0, :n_out].set(
        jnp.asarray(b6, jnp.float32))

    return dict(
        w1=wt(w1), b1=br(b1),
        w2=wt(w2), b2=br(b2),
        w3=wt(w3), b3=br(b3),
        w4=wt(w4), b4=br(b4),
        w5=wt(w5), b5=br(b5),
        w6=w6p.astype(jnp.bfloat16), b6=b6p,
        n_out=n_out, n_out_pad=n_out_pad,
    )


def net_ann6_forward(x, params, *, block_batch=512):
    """Forward pass. x: [B, n_in] float32 (or bf16). Returns [B, n_out] float32."""
    B, n_in = x.shape
    neurons = params["w1"].shape[1]
    n_out = params["n_out"]
    n_out_pad = params["n_out_pad"]

    # Batch tiling: tile must be a multiple of 8 sublanes; pad B up to a multiple
    # of the tile (padded rows compute garbage and are sliced away afterwards).
    tb = min(block_batch, _round_up(B, 8))
    bp = _round_up(B, tb)

    x_bf = jnp.asarray(x, jnp.bfloat16)
    if bp != B:
        x_bf = jnp.pad(x_bf, ((0, bp - B), (0, 0)))

    grid = (bp // tb,)
    resident = lambda i: (0, 0)   # weights/biases: same block every step -> stay in VMEM
    batched = lambda i: (i, 0)    # x / out: stream over the batch

    flops = 2 * bp * (n_in * neurons + 4 * neurons * neurons + neurons * n_out_pad)
    bytes_accessed = (
        bp * n_in * 2 + bp * n_out_pad * 4                                    # x, out
        + (n_in * neurons + 4 * neurons * neurons + neurons * n_out_pad) * 2  # weights
        + (5 * neurons + n_out_pad) * 4                                       # biases
    )

    out = pl.pallas_call(
        _mlp6_kernel,
        out_shape=jax.ShapeDtypeStruct((bp, n_out_pad), jnp.float32),
        grid_spec=pltpu.PrefetchScalarGridSpec(
            num_scalar_prefetch=0,
            grid=grid,
            in_specs=[
                pl.BlockSpec((tb, n_in), batched),
                pl.BlockSpec((n_in, neurons), resident),
                pl.BlockSpec((1, neurons), resident),
                pl.BlockSpec((neurons, neurons), resident),
                pl.BlockSpec((1, neurons), resident),
                pl.BlockSpec((neurons, neurons), resident),
                pl.BlockSpec((1, neurons), resident),
                pl.BlockSpec((neurons, neurons), resident),
                pl.BlockSpec((1, neurons), resident),
                pl.BlockSpec((neurons, neurons), resident),
                pl.BlockSpec((1, neurons), resident),
                pl.BlockSpec((neurons, n_out_pad), resident),
                pl.BlockSpec((1, n_out_pad), resident),
            ],
            out_specs=pl.BlockSpec((tb, n_out_pad), batched),
        ),
        compiler_params=pltpu.CompilerParams(
            dimension_semantics=("parallel",),   # megacore sharding on v7x, neutral elsewhere
        ),
        cost_estimate=pl.CostEstimate(
            flops=flops, transcendentals=0, bytes_accessed=bytes_accessed),
    )(x_bf,
      params["w1"], params["b1"], params["w2"], params["b2"],
      params["w3"], params["b3"], params["w4"], params["b4"],
      params["w5"], params["b5"], params["w6"], params["b6"])

    return out[:B, :n_out]


def _init_linear(key, out_features, in_features):
    """Deterministic PyTorch-style nn.Linear init."""
    kw, kb = jax.random.split(key)
    bound = 1.0 / math.sqrt(in_features)
    w = jax.random.uniform(kw, (out_features, in_features),
                           minval=-bound, maxval=bound, dtype=jnp.float32)
    b = jax.random.uniform(kb, (out_features,),
                           minval=-bound, maxval=bound, dtype=jnp.float32)
    return w, b


if __name__ == "__main__":
    # Small shapes consistent with the module: n_in=32, neurons=128, n_out=16, batch=8.
    B, n_in, neurons, n_out = 8, 32, NEURONS, 16

    key = jax.random.PRNGKey(0)
    kx, k1, k2, k3, k4, k5, k6 = jax.random.split(key, 7)
    x = jax.random.normal(kx, (B, n_in), dtype=jnp.float32)

    layer_dims = [(neurons, n_in)] + [(neurons, neurons)] * 4 + [(n_out, neurons)]
    layer_keys = [k1, k2, k3, k4, k5, k6]
    Ws, Bs = [], []
    for kk, (o, i) in zip(layer_keys, layer_dims):
        w, b = _init_linear(kk, o, i)
        Ws.append(w)
        Bs.append(b)

    params = prepare_params(Ws, Bs)   # one-time preprocessing (not in forward path)

    y = net_ann6_forward(x, params)
    y = jax.block_until_ready(y)

    # Pure-JAX reference with the same bf16 quantization of inputs/weights as the
    # kernel (f32 accumulation), so the comparison isolates kernel correctness.
    def ref_forward(xf, Ws, Bs):
        h = xf.astype(jnp.bfloat16).astype(jnp.float32)
        for i, (w, b) in enumerate(zip(Ws, Bs)):
            wq = jnp.asarray(w, jnp.float32).astype(jnp.bfloat16).astype(jnp.float32)
            h = h @ wq.T + b
            if i < 5:
                h = jnp.maximum(h, 0.0).astype(jnp.bfloat16).astype(jnp.float32)
        return h

    y_ref = ref_forward(x, Ws, Bs)
    assert y.shape == (B, n_out)
    assert jnp.allclose(y, y_ref, atol=1e-2, rtol=1e-2), float(jnp.max(jnp.abs(y - y_ref)))

    print("KERNEL_OK")
</pallas_src>

<mosaic_0001>
module attributes {stable_mosaic.version = 11 : i64} {
  func.func @_mlp6_kernel(%arg0: i32, %arg1: memref<8x32xbf16, #tpu.memory_space<vmem>>, %arg2: memref<32x128xbf16, #tpu.memory_space<vmem>>, %arg3: memref<1x128xf32, #tpu.memory_space<vmem>>, %arg4: memref<128x128xbf16, #tpu.memory_space<vmem>>, %arg5: memref<1x128xf32, #tpu.memory_space<vmem>>, %arg6: memref<128x128xbf16, #tpu.memory_space<vmem>>, %arg7: memref<1x128xf32, #tpu.memory_space<vmem>>, %arg8: memref<128x128xbf16, #tpu.memory_space<vmem>>, %arg9: memref<1x128xf32, #tpu.memory_space<vmem>>, %arg10: memref<128x128xbf16, #tpu.memory_space<vmem>>, %arg11: memref<1x128xf32, #tpu.memory_space<vmem>>, %arg12: memref<128x128xbf16, #tpu.memory_space<vmem>>, %arg13: memref<1x128xf32, #tpu.memory_space<vmem>>, %arg14: memref<8x128xf32, #tpu.memory_space<vmem>>) attributes {dimension_semantics = [#tpu.dimension_semantics<parallel>], iteration_bounds = array<i64: 1>, scalar_prefetch = 0 : i64, scratch_operands = 0 : i64, tpu.core_type = #tpu.core_type<tc>, window_params = [{transform_indices = @transform_0, window_bounds = array<i64: 8, 32>}, {pipeline_mode = #tpu.pipeline_mode<synchronous>, transform_indices = @transform_1, window_bounds = array<i64: 32, 128>}, {pipeline_mode = #tpu.pipeline_mode<synchronous>, transform_indices = @transform_2, window_bounds = array<i64: 1, 128>}, {pipeline_mode = #tpu.pipeline_mode<synchronous>, transform_indices = @transform_3, window_bounds = array<i64: 128, 128>}, {pipeline_mode = #tpu.pipeline_mode<synchronous>, transform_indices = @transform_4, window_bounds = array<i64: 1, 128>}, {pipeline_mode = #tpu.pipeline_mode<synchronous>, transform_indices = @transform_5, window_bounds = array<i64: 128, 128>}, {pipeline_mode = #tpu.pipeline_mode<synchronous>, transform_indices = @transform_6, window_bounds = array<i64: 1, 128>}, {pipeline_mode = #tpu.pipeline_mode<synchronous>, transform_indices = @transform_7, window_bounds = array<i64: 128, 128>}, {pipeline_mode = #tpu.pipeline_mode<synchronous>, transform_indices = @transform_8, window_bounds = array<i64: 1, 128>}, {pipeline_mode = #tpu.pipeline_mode<synchronous>, transform_indices = @transform_9, window_bounds = array<i64: 128, 128>}, {pipeline_mode = #tpu.pipeline_mode<synchronous>, transform_indices = @transform_10, window_bounds = array<i64: 1, 128>}, {pipeline_mode = #tpu.pipeline_mode<synchronous>, transform_indices = @transform_11, window_bounds = array<i64: 128, 128>}, {pipeline_mode = #tpu.pipeline_mode<synchronous>, transform_indices = @transform_12, window_bounds = array<i64: 1, 128>}, {transform_indices = @transform_13, window_bounds = array<i64: 8, 128>}]} {
    %c0 = arith.constant 0 : index
    %c0_0 = arith.constant 0 : index
    %0 = vector.load %arg1[%c0, %c0_0] : memref<8x32xbf16, #tpu.memory_space<vmem>>, vector<8x32xbf16>
    %c0_1 = arith.constant 0 : index
    %c0_2 = arith.constant 0 : index
    %1 = vector.load %arg2[%c0_1, %c0_2] : memref<32x128xbf16, #tpu.memory_space<vmem>>, vector<32x128xbf16>
    %cst = arith.constant dense<0.000000e+00> : vector<8x128xf32>
    %2 = tpu.matmul %0, %1, %cst {dimension_numbers = #tpu.dot_dimension_numbers<[1], [0], [0], [1], [0, 0, 1, 1], [], []>} : vector<8x32xbf16>, vector<32x128xbf16>, vector<8x128xf32> -> vector<8x128xf32>
    %c0_3 = arith.constant 0 : index
    %c0_4 = arith.constant 0 : index
    %3 = vector.load %arg3[%c0_3, %c0_4] : memref<1x128xf32, #tpu.memory_space<vmem>>, vector<1x128xf32>
    %4 = vector.broadcast %3 : vector<1x128xf32> to vector<8x128xf32>
    %5 = arith.addf %2, %4 : vector<8x128xf32>
    %cst_5 = arith.constant 0.000000e+00 : f32
    %6 = vector.broadcast %cst_5 : f32 to vector<8x128xf32>
    %7 = arith.maximumf %5, %6 : vector<8x128xf32>
    %8 = arith.truncf %7 : vector<8x128xf32> to vector<8x128xbf16>
    %c0_6 = arith.constant 0 : index
    %c0_7 = arith.constant 0 : index
    %9 = vector.load %arg4[%c0_6, %c0_7] : memref<128x128xbf16, #tpu.memory_space<vmem>>, vector<128x128xbf16>
    %cst_8 = arith.constant dense<0.000000e+00> : vector<8x128xf32>
    %10 = tpu.matmul %8, %9, %cst_8 {dimension_numbers = #tpu.dot_dimension_numbers<[1], [0], [0], [1], [0, 0, 1, 1], [], []>} : vector<8x128xbf16>, vector<128x128xbf16>, vector<8x128xf32> -> vector<8x128xf32>
    %c0_9 = arith.constant 0 : index
    %c0_10 = arith.constant 0 : index
    %11 = vector.load %arg5[%c0_9, %c0_10] : memref<1x128xf32, #tpu.memory_space<vmem>>, vector<1x128xf32>
    %12 = vector.broadcast %11 : vector<1x128xf32> to vector<8x128xf32>
    %13 = arith.addf %10, %12 : vector<8x128xf32>
    %cst_11 = arith.constant 0.000000e+00 : f32
    %14 = vector.broadcast %cst_11 : f32 to vector<8x128xf32>
    %15 = arith.maximumf %13, %14 : vector<8x128xf32>
    %16 = arith.truncf %15 : vector<8x128xf32> to vector<8x128xbf16>
    %c0_12 = arith.constant 0 : index
    %c0_13 = arith.constant 0 : index
    %17 = vector.load %arg6[%c0_12, %c0_13] : memref<128x128xbf16, #tpu.memory_space<vmem>>, vector<128x128xbf16>
    %cst_14 = arith.constant dense<0.000000e+00> : vector<8x128xf32>
    %18 = tpu.matmul %16, %17, %cst_14 {dimension_numbers = #tpu.dot_dimension_numbers<[1], [0], [0], [1], [0, 0, 1, 1], [], []>} : vector<8x128xbf16>, vector<128x128xbf16>, vector<8x128xf32> -> vector<8x128xf32>
    %c0_15 = arith.constant 0 : index
    %c0_16 = arith.constant 0 : index
    %19 = vector.load %arg7[%c0_15, %c0_16] : memref<1x128xf32, #tpu.memory_space<vmem>>, vector<1x128xf32>
    %20 = vector.broadcast %19 : vector<1x128xf32> to vector<8x128xf32>
    %21 = arith.addf %18, %20 : vector<8x128xf32>
    %cst_17 = arith.constant 0.000000e+00 : f32
    %22 = vector.broadcast %cst_17 : f32 to vector<8x128xf32>
    %23 = arith.maximumf %21, %22 : vector<8x128xf32>
    %24 = arith.truncf %23 : vector<8x128xf32> to vector<8x128xbf16>
    %c0_18 = arith.constant 0 : index
    %c0_19 = arith.constant 0 : index
    %25 = vector.load %arg8[%c0_18, %c0_19] : memref<128x128xbf16, #tpu.memory_space<vmem>>, vector<128x128xbf16>
    %cst_20 = arith.constant dense<0.000000e+00> : vector<8x128xf32>
    %26 = tpu.matmul %24, %25, %cst_20 {dimension_numbers = #tpu.dot_dimension_numbers<[1], [0], [0], [1], [0, 0, 1, 1], [], []>} : vector<8x128xbf16>, vector<128x128xbf16>, vector<8x128xf32> -> vector<8x128xf32>
    %c0_21 = arith.constant 0 : index
    %c0_22 = arith.constant 0 : index
    %27 = vector.load %arg9[%c0_21, %c0_22] : memref<1x128xf32, #tpu.memory_space<vmem>>, vector<1x128xf32>
    %28 = vector.broadcast %27 : vector<1x128xf32> to vector<8x128xf32>
    %29 = arith.addf %26, %28 : vector<8x128xf32>
    %cst_23 = arith.constant 0.000000e+00 : f32
    %30 = vector.broadcast %cst_23 : f32 to vector<8x128xf32>
    %31 = arith.maximumf %29, %30 : vector<8x128xf32>
    %32 = arith.truncf %31 : vector<8x128xf32> to vector<8x128xbf16>
    %c0_24 = arith.constant 0 : index
    %c0_25 = arith.constant 0 : index
    %33 = vector.load %arg10[%c0_24, %c0_25] : memref<128x128xbf16, #tpu.memory_space<vmem>>, vector<128x128xbf16>
    %cst_26 = arith.constant dense<0.000000e+00> : vector<8x128xf32>
    %34 = tpu.matmul %32, %33, %cst_26 {dimension_numbers = #tpu.dot_dimension_numbers<[1], [0], [0], [1], [0, 0, 1, 1], [], []>} : vector<8x128xbf16>, vector<128x128xbf16>, vector<8x128xf32> -> vector<8x128xf32>
    %c0_27 = arith.constant 0 : index
    %c0_28 = arith.constant 0 : index
    %35 = vector.load %arg11[%c0_27, %c0_28] : memref<1x128xf32, #tpu.memory_space<vmem>>, vector<1x128xf32>
    %36 = vector.broadcast %35 : vector<1x128xf32> to vector<8x128xf32>
    %37 = arith.addf %34, %36 : vector<8x128xf32>
    %cst_29 = arith.constant 0.000000e+00 : f32
    %38 = vector.broadcast %cst_29 : f32 to vector<8x128xf32>
    %39 = arith.maximumf %37, %38 : vector<8x128xf32>
    %40 = arith.truncf %39 : vector<8x128xf32> to vector<8x128xbf16>
    %c0_30 = arith.constant 0 : index
    %c0_31 = arith.constant 0 : index
    %41 = vector.load %arg12[%c0_30, %c0_31] : memref<128x128xbf16, #tpu.memory_space<vmem>>, vector<128x128xbf16>
    %cst_32 = arith.constant dense<0.000000e+00> : vector<8x128xf32>
    %42 = tpu.matmul %40, %41, %cst_32 {dimension_numbers = #tpu.dot_dimension_numbers<[1], [0], [0], [1], [0, 0, 1, 1], [], []>} : vector<8x128xbf16>, vector<128x128xbf16>, vector<8x128xf32> -> vector<8x128xf32>
    %c0_33 = arith.constant 0 : index
    %c0_34 = arith.constant 0 : index
    %43 = vector.load %arg13[%c0_33, %c0_34] : memref<1x128xf32, #tpu.memory_space<vmem>>, vector<1x128xf32>
    %44 = vector.broadcast %43 : vector<1x128xf32> to vector<8x128xf32>
    %45 = arith.addf %42, %44 : vector<8x128xf32>
    %c0_35 = arith.constant 0 : index
    %c0_36 = arith.constant 0 : index
    %46 = vector.load %arg14[%c0_35, %c0_36] : memref<8x128xf32, #tpu.memory_space<vmem>>, vector<8x128xf32>
    tpu.vector_store %arg14[%c0_35, %c0_36], %45 {strides = array<i32>} : memref<8x128xf32, #tpu.memory_space<vmem>>, vector<8x128xf32>,
    return
  }
  func.func @transform_0(%arg0: i32) -> (i32, i32) {
    %c0_i32 = arith.constant 0 : i32
    %c0_i32_0 = arith.constant 0 : i32
    return %arg0, %c0_i32 : i32, i32
  }
  func.func @transform_1(%arg0: i32) -> (i32, i32) {
    %c0_i32 = arith.constant 0 : i32
    %c0_i32_0 = arith.constant 0 : i32
    %c0_i32_1 = arith.constant 0 : i32
    return %c0_i32, %c0_i32_0 : i32, i32
  }
  func.func @transform_2(%arg0: i32) -> (i32, i32) {
    %c0_i32 = arith.constant 0 : i32
    %c0_i32_0 = arith.constant 0 : i32
    %c0_i32_1 = arith.constant 0 : i32
    return %c0_i32, %c0_i32_0 : i32, i32
  }
  func.func @transform_3(%arg0: i32) -> (i32, i32) {
    %c0_i32 = arith.constant 0 : i32
    %c0_i32_0 = arith.constant 0 : i32
    %c0_i32_1 = arith.constant 0 : i32
    return %c0_i32, %c0_i32_0 : i32, i32
  }
  func.func @transform_4(%arg0: i32) -> (i32, i32) {
    %c0_i32 = arith.constant 0 : i32
    %c0_i32_0 = arith.constant 0 : i32
    %c0_i32_1 = arith.constant 0 : i32
    return %c0_i32, %c0_i32_0 : i32, i32
  }
  func.func @transform_5(%arg0: i32) -> (i32, i32) {
    %c0_i32 = arith.constant 0 : i32
    %c0_i32_0 = arith.constant 0 : i32
    %c0_i32_1 = arith.constant 0 : i32
    return %c0_i32, %c0_i32_0 : i32, i32
  }
  func.func @transform_6(%arg0: i32) -> (i32, i32) {
    %c0_i32 = arith.constant 0 : i32
    %c0_i32_0 = arith.constant 0 : i32
    %c0_i32_1 = arith.constant 0 : i32
    return %c0_i32, %c0_i32_0 : i32, i32
  }
  func.func @transform_7(%arg0: i32) -> (i32, i32) {
    %c0_i32 = arith.constant 0 : i32
    %c0_i32_0 = arith.constant 0 : i32
    %c0_i32_1 = arith.constant 0 : i32
    return %c0_i32, %c0_i32_0 : i32, i32
  }
  func.func @transform_8(%arg0: i32) -> (i32, i32) {
    %c0_i32 = arith.constant 0 : i32
    %c0_i32_0 = arith.constant 0 : i32
    %c0_i32_1 = arith.constant 0 : i32
    return %c0_i32, %c0_i32_0 : i32, i32
  }
  func.func @transform_9(%arg0: i32) -> (i32, i32) {
    %c0_i32 = arith.constant 0 : i32
    %c0_i32_0 = arith.constant 0 : i32
    %c0_i32_1 = arith.constant 0 : i32
    return %c0_i32, %c0_i32_0 : i32, i32
  }
  func.func @transform_10(%arg0: i32) -> (i32, i32) {
    %c0_i32 = arith.constant 0 : i32
    %c0_i32_0 = arith.constant 0 : i32
    %c0_i32_1 = arith.constant 0 : i32
    return %c0_i32, %c0_i32_0 : i32, i32
  }
  func.func @transform_11(%arg0: i32) -> (i32, i32) {
    %c0_i32 = arith.constant 0 : i32
    %c0_i32_0 = arith.constant 0 : i32
    %c0_i32_1 = arith.constant 0 : i32
    return %c0_i32, %c0_i32_0 : i32, i32
  }
  func.func @transform_12(%arg0: i32) -> (i32, i32) {
    %c0_i32 = arith.constant 0 : i32
    %c0_i32_0 = arith.constant 0 : i32
    %c0_i32_1 = arith.constant 0 : i32
    return %c0_i32, %c0_i32_0 : i32, i32
  }
  func.func @transform_13(%arg0: i32) -> (i32, i32) {
    %c0_i32 = arith.constant 0 : i32
    %c0_i32_0 = arith.constant 0 : i32
    return %arg0, %c0_i32 : i32, i32
  }
}

</mosaic_0001>

<bundles_post_ra>
// kernel: tpu_custom_call.1
= control target key start
LH: loop header
LB: loop body
LE: loop exit
PB: predicated region body
PF: predicated region fallthrough
CT: control target
= control target key end

     0   :  { %18 = vsyncpa [#allocation3], 0  ;;  %s1416_s0 = inlined_call_operand.hbm [shape: bf16[8,32], index: 0, kind: input, shape index: {}]   ;;  %s1417_s1 = inlined_call_operand.hbm [shape: bf16[32,128], index: 1, kind: input, shape index: {}]   ;;  %s1418_s2 = inlined_call_operand.vmem [shape: f32[1,128], index: 2, kind: input, shape index: {}]   ;;  %s1419_s3 = inlined_call_operand.hbm [shape: bf16[128,128], index: 3, kind: input, shape index: {}]   ;;  %s1420_s4 = inlined_call_operand.vmem [shape: f32[1,128], index: 4, kind: input, shape index: {}]   ;;  %s1421_s5 = inlined_call_operand.hbm [shape: bf16[128,128], index: 5, kind: input, shape index: {}]   ;;  %s1422_s6 = inlined_call_operand.vmem [shape: f32[1,128], index: 6, kind: input, shape index: {}]   ;;  %s1423_s7 = inlined_call_operand.hbm [shape: bf16[128,128], index: 7, kind: input, shape index: {}]   ;;  %s1424_s8 = inlined_call_operand.vmem [shape: f32[1,128], index: 8, kind: input, shape index: {}]   ;;  %s1425_s9 = inlined_call_operand.hbm [shape: bf16[128,128], index: 9, kind: input, shape index: {}]   ;;  %s1426_s10 = inlined_call_operand.vmem [shape: f32[1,128], index: 10, kind: input, shape index: {}]   ;;  %s1427_s11 = inlined_call_operand.hbm [shape: bf16[128,128], index: 11, kind: input, shape index: {}]   ;;  %s1428_s12 = inlined_call_operand.vmem [shape: f32[1,128], index: 12, kind: input, shape index: {}]   ;;  %s1429_s13 = inlined_call_operand.hbm [shape: f32[8,128], index: 13, kind: output, shape index: {}]  }
   0x1   :  { %19 = vsyncpa [#allocation6], 0 }
   0x2   :  { %20 = vsyncpa [#allocation9], 0 }
   0x3   :  { %21 = vsyncpa [#allocation12], 0 }
   0x4   :  { %22 = vsyncpa [#allocation4], 0  ;;  %s1220_s25 = smov [#allocation5]  }
   0x5   :  { %s38_s26 = sshll.u32 %s1220_s25, 4  ;;  %s39_s26 = int_to_ptr.vmem [resolvable:$true] %s38_s26 }
   0x6   :  { %s1058_s27 = scalar_lea.vmem %s39_s26, 256  ;;  %p1063_p1 = scmp.lt.s32.totalorder %s39_s26, %s39_s26 }
   0x7   :  { %p1059_p0 = scmp.ne.s32.totalorder %s39_s26, %s1058_s27  ;;  %p1064_p2 = scmp.lt.s32.totalorder %s1058_s27, %s1058_s27 }
   0x9   :  { %p1065_p3 = por %p1064_p2, %p1063_p1 }
   0xb   :  { %p1066_p4 = pnand %p1065_p3, %p1059_p0 }
   0xd   :  { %1069 = shalt.err (!%p1066_p4)
}
   0xe   :  { %s1221_s28 = smov 64   ;;  %s1222_s29 = smov 4  }
   0xf   :  { %44 = dma.hbm_to_vmem [thread:$0]  %s1417_s1, 256, %s39_s26, [#allocation6], %s1221_s28, %s1221_s28, %s1222_s29  }
  0x10   :  { %s1223_s15 = smov [#allocation8]   ;;  %s1224_s17 = smov [#allocation11]  }
  0x11   :  { %s66_s16 = sshll.u32 %s1223_s15, 4  ;;  %s94_s18 = sshll.u32 %s1224_s17, 4  ;;  %s67_s16 = int_to_ptr.vmem [resolvable:$true] %s66_s16  ;;  %s95_s18 = int_to_ptr.vmem [resolvable:$true] %s94_s18 }
  0x12   :  { %s1078_s19 = scalar_lea.vmem %s67_s16, 1024  ;;  %p1083_p6 = scmp.lt.s32.totalorder %s67_s16, %s67_s16 }
  0x13   :  { %p1079_p5 = scmp.ne.s32.totalorder %s67_s16, %s1078_s19  ;;  %p1084_p7 = scmp.lt.s32.totalorder %s1078_s19, %s1078_s19 }
  0x15   :  { %p1085_p8 = por %p1084_p7, %p1083_p6 }
  0x17   :  { %p1086_p9 = pnand %p1085_p8, %p1079_p5 }
  0x19   :  { %1089 = shalt.err (!%p1086_p9)
}
  0x1a   :  { %72 = dma.hbm_to_vmem [thread:$0]  %s1421_s5, 1024, %s67_s16, [#allocation9], %s1221_s28, %s1221_s28, %s1222_s29  }
  0x1b   :  { %s1098_s1 = scalar_lea.vmem %s95_s18, 1024  ;;  %p1103_p11 = scmp.lt.s32.totalorder %s95_s18, %s95_s18 }
  0x1c   :  { %p1099_p10 = scmp.ne.s32.totalorder %s95_s18, %s1098_s1  ;;  %p1104_p12 = scmp.lt.s32.totalorder %s1098_s1, %s1098_s1 }
  0x1e   :  { %p1105_p13 = por %p1104_p12, %p1103_p11 }
  0x20   :  { %p1106_p0 = pnand %p1105_p13, %p1099_p10 }
  0x22   :  { %1109 = shalt.err (!%p1106_p0)
}
  0x23   :  { %100 = dma.hbm_to_vmem [thread:$0]  %s1425_s9, 1024, %s95_s18, [#allocation12], %s1221_s28, %s1221_s28, %s1222_s29  }
  0x24   :  { %s1225_s24 = smov [#allocation2]   ;;  %s1226_s26 = smov [#allocation7]  }
  0x25   :  { %s29_s25 = sshll.u32 %s1225_s24, 4  ;;  %s52_s5 = sshll.u32 %s1226_s26, 4  ;;  %s30_s25 = int_to_ptr.vmem [resolvable:$true] %s29_s25  ;;  %s53_s5 = int_to_ptr.vmem [resolvable:$true] %s52_s5 }
  0x26   :  { %s1118_s27 = scalar_lea.vmem %s30_s25, 64  ;;  %p1123_p2 = scmp.lt.s32.totalorder %s30_s25, %s30_s25 }
  0x27   :  { %p1119_p1 = scmp.ne.s32.totalorder %s30_s25, %s1118_s27  ;;  %p1124_p3 = scmp.lt.s32.totalorder %s1118_s27, %s1118_s27 }
  0x29   :  { %p1125_p4 = por %p1124_p3, %p1123_p2 }
  0x2b   :  { %p1126_p5 = pnand %p1125_p4, %p1119_p1 }
  0x2d   :  { %1129 = shalt.err (!%p1126_p5)
}
  0x2e   :  { %32 = dma.hbm_to_vmem [thread:$0]  %s1416_s0, 64, %s30_s25, [#allocation3]  }
  0x2f   :  { %s1138_s15 = scalar_lea.vmem %s53_s5, 1024  ;;  %p1143_p7 = scmp.lt.s32.totalorder %s53_s5, %s53_s5 }
  0x30   :  { %p1139_p6 = scmp.ne.s32.totalorder %s53_s5, %s1138_s15  ;;  %p1144_p8 = scmp.lt.s32.totalorder %s1138_s15, %s1138_s15 }
  0x32   :  { %p1145_p9 = por %p1144_p8, %p1143_p7 }
  0x34   :  { %p1146_p10 = pnand %p1145_p9, %p1139_p6 }
  0x36   :  { %1149 = shalt.err (!%p1146_p10)
}
  0x37   :  { %58 = dma.hbm_to_vmem [thread:$0]  %s1419_s3, 1024, %s53_s5, [#allocation6], %s1221_s28, %s1221_s28, %s1222_s29  }
  0x38   :  { %s1227_s17 = smov [#allocation10]   ;;  %s1228_s19 = smov [#allocation13]  }
  0x39   :  { %s80_s18 = sshll.u32 %s1227_s17, 4  ;;  %s108_s0 = sshll.u32 %s1228_s19, 4  ;;  %s81_s18 = int_to_ptr.vmem [resolvable:$true] %s80_s18  ;;  %s109_s0 = int_to_ptr.vmem [resolvable:$true] %s108_s0 }
  0x3a   :  { %s1158_s20 = scalar_lea.vmem %s81_s18, 1024  ;;  %p1163_p12 = scmp.lt.s32.totalorder %s81_s18, %s81_s18 }
  0x3b   :  { %p1159_p11 = scmp.ne.s32.totalorder %s81_s18, %s1158_s20  ;;  %p1164_p13 = scmp.lt.s32.totalorder %s1158_s20, %s1158_s20 }
  0x3d   :  { %p1165_p0 = por %p1164_p13, %p1163_p12 }
  0x3f   :  { %p1166_p1 = pnand %p1165_p0, %p1159_p11 }
  0x41   :  { %1169 = shalt.err (!%p1166_p1)
}
  0x42   :  { %86 = dma.hbm_to_vmem [thread:$0]  %s1423_s7, 1024, %s81_s18, [#allocation9], %s1221_s28, %s1221_s28, %s1222_s29  }
  0x43   :  { %s1178_s3 = scalar_lea.vmem %s109_s0, 1024  ;;  %p1183_p3 = scmp.lt.s32.totalorder %s109_s0, %s109_s0 }
  0x44   :  { %p1179_p2 = scmp.ne.s32.totalorder %s109_s0, %s1178_s3  ;;  %p1184_p4 = scmp.lt.s32.totalorder %s1178_s3, %s1178_s3 }
  0x46   :  { %p1185_p5 = por %p1184_p4, %p1183_p3 }
  0x48   :  { %p1186_p6 = pnand %p1185_p5, %p1179_p2 }
  0x4a   :  { %1189 = shalt.err (!%p1186_p6)
}
  0x4b   :  { %114 = dma.hbm_to_vmem [thread:$0]  %s1427_s11, 1024, %s109_s0, [#allocation12], %s1221_s28, %s1221_s28, %s1222_s29  }
  0x4c   :  { %1210 = dma.done.wait [#allocation3], 64  }
  0x4d   :  { %1211 = vsyncadd [#allocation3], 4294967232 }
  0x4e   :  { %1212 = dma.done.wait [#allocation6], 1280  }
  0x4f   :  { %1213 = vsyncadd [#allocation6], 4294966016 }
  0x50   :  { %1214 = dma.done.wait [#allocation9], 2048  }
  0x51   :  { %1215 = vsyncadd [#allocation9], 4294965248 }
  0x52   :  { %1216 = dma.done.wait [#allocation12], 2048  }
  0x53   :  { %1217 = vsyncadd [#allocation12], 4294965248  ;;  %v1229_v0 = vmov 0.0   ;;  %vm1230_vm0 = vmmov 0   ;;  %v1008_v1 = vld [vmem:[#allocation5 + $0x8] sm:$0xff]   ;;  %v1009_v2 = vld [vmem:[#allocation5] sm:$0xff]  }
  0x54   :  { %888 = vmatprep.subr.bf16.mxu0 %v1229_v0  ;;  %892 = vmatprep.mubr.msk.bf16.mxu0 %vm1230_vm0, %v1229_v0  ;;  %v1010_v3 = vld [vmem:[#allocation7 + $0x38] sm:$0xff]   ;;  %vm163_vm1 = vcmask 261120   ;;  %v1011_v4 = vld [vmem:[#allocation7 + $0x30] sm:$0xff]   ;;  %v139_v5 = vld [vmem:[#allocation2] sm:$0xf]  ;;  %s1231_s27 = smov [#allocation14]  }
  0x55   :  { %896 = vmatprep.subr.bf16.mxu1 %v1229_v0  ;;  %912 = vmatprep.mubr.msk.bf16.mxu1 %vm1230_vm0, %v1229_v0  ;;  %v1012_v6 = vld [vmem:[#allocation7 + $0x28] sm:$0xff]   ;;  %v1013_v7 = vld [vmem:[#allocation7 + $0x20] sm:$0xff]   ;;  %v1014_v8 = vld [vmem:[#allocation7 + $0x18] sm:$0xff]   ;;  %s779_s30 = sshll.u32 %s1231_s27, 4  ;;  %s780_s30 = int_to_ptr.vmem [resolvable:$true] %s779_s30 }
  0x56   :  { %889 = vmatpush3.bf16.msra.mxu0 %v1008_v1  ;;  %897 = vmatpush3.bf16.msra.mxu1 %v1010_v3  ;;  %v1015_v9 = vld [vmem:[#allocation7 + $0x10] sm:$0xff]   ;;  %v1016_v10 = vld [vmem:[#allocation7 + $0x8] sm:$0xff]   ;;  %v1017_v11 = vld [vmem:[#allocation7] sm:$0xff]   ;;  %p1195_p8 = scmp.lt.s32.totalorder %s780_s30, %s780_s30 }
  0x57   :  { %890 = vmatprep.subr.bf16.mxu0 %v1229_v0  ;;  %898 = vmatprep.subr.bf16.mxu1 %v1229_v0  ;;  %v1018_v12 = vld [vmem:[#allocation8 + $0x38] sm:$0xff]   ;;  %v1019_v13 = vld [vmem:[#allocation8 + $0x30] sm:$0xff]   ;;  %v1020_v14 = vld [vmem:[#allocation8 + $0x28] sm:$0xff]  }
  0x58   :  { %v1021_v15 = vld [vmem:[#allocation8 + $0x20] sm:$0xff]   ;;  %v1022_v16 = vld [vmem:[#allocation8 + $0x18] sm:$0xff]   ;;  %v1023_v17 = vld [vmem:[#allocation8 + $0x10] sm:$0xff]  }
  0x59   :  { %v791_v18 = vld [vmem:[%s1418_s2] ss:$0 sm:$0xff]  ;;  %v1025_v27 = vld [vmem:[#allocation8] sm:$0xff]   ;;  %v1026_v28 = vld [vmem:[#allocation10 + $0x38] sm:$0xff]  }
  0x5a   :  { %891 = vmatpush3.bf16.msra.mxu0 %v1009_v2  ;;  %899 = vmatpush3.bf16.msra.mxu1 %v1011_v4  ;;  %v1024_v26 = vld [vmem:[#allocation8 + $0x8] sm:$0xff]   ;;  %v1027_v29 = vld [vmem:[#allocation10 + $0x30] sm:$0xff]   ;;  %v1029_v31 = vld [vmem:[#allocation10 + $0x20] sm:$0xff]  }
  0x5b   :  { %916 = vmatprep.subr.bf16.mxu0 %v1229_v0  ;;  %900 = vmatprep.subr.bf16.mxu1 %v1229_v0  ;;  %v1028_v30 = vld [vmem:[#allocation10 + $0x28] sm:$0xff]   ;;  %v1030_v32 = vld [vmem:[#allocation10 + $0x18] sm:$0xff]   ;;  %v1031_v33 = vld [vmem:[#allocation10 + $0x10] sm:$0xff]  }
  0x5c   :  { %v795_v34 = vld [vmem:[%s1420_s4] ss:$0 sm:$0xff]  ;;  %v1033_v43 = vld [vmem:[#allocation10] sm:$0xff]   ;;  %v1034_v44 = vld [vmem:[#allocation11 + $0x38] sm:$0xff]  }
  0x5d   :  { %893 = vmatmul.mubr.msk.bf16.vlgmr.msra.gmra.mxu0 %vm163_vm1, %v139_v5  ;;  %v1032_v42 = vld [vmem:[#allocation10 + $0x8] sm:$0xff]   ;;  %v1035_v45 = vld [vmem:[#allocation11 + $0x30] sm:$0xff]   ;;  %v1037_v47 = vld [vmem:[#allocation11 + $0x20] sm:$0xff]  }
  0x5e   :  { %932 = vmatprep.mubr.msk.bf16.mxu0 %vm1230_vm0, %v1229_v0  ;;  %901 = vmatpush3.bf16.msra.mxu1 %v1012_v6  ;;  %v1036_v46 = vld [vmem:[#allocation11 + $0x28] sm:$0xff]   ;;  %v1038_v48 = vld [vmem:[#allocation11 + $0x18] sm:$0xff]   ;;  %v1039_v49 = vld [vmem:[#allocation11 + $0x10] sm:$0xff]  }
  0x5f   :  { %902 = vmatprep.subr.bf16.mxu1 %v1229_v0  ;;  %917 = vmatpush3.bf16.msra.mxu0 %v1018_v12  ;;  %v804_v50 = vld [vmem:[%s1422_s6] ss:$0 sm:$0xff]  ;;  %v1041_v59 = vld [vmem:[#allocation11] sm:$0xff]   ;;  %v1042_v60 = vld [vmem:[#allocation13 + $0x38] sm:$0xff]  }
  0x60   :  { %918 = vmatprep.subr.bf16.mxu0 %v1229_v0  ;;  %v1040_v58 = vld [vmem:[#allocation11 + $0x8] sm:$0xff]   ;;  %v1043_v61 = vld [vmem:[#allocation13 + $0x30] sm:$0xff]   ;;  %v1045_v63 = vld [vmem:[#allocation13 + $0x20] sm:$0xff]  }
  0x61   :  { %v1044_v62 = vld [vmem:[#allocation13 + $0x28] sm:$0xff]   ;;  %v1046_v1 = vld [vmem:[#allocation13 + $0x18] sm:$0xff]   ;;  %v1047_v2 = vld [vmem:[#allocation13 + $0x10] sm:$0xff]  }
  0x62   :  { %903 = vmatpush3.bf16.msra.mxu1 %v1013_v7  ;;  %v813_v3 = vld [vmem:[%s1424_s8] ss:$0 sm:$0xff]  ;;  %v1049_v12 = vld [vmem:[#allocation13] sm:$0xff]  }
  0x63   :  { %904 = vmatprep.subr.bf16.mxu1 %v1229_v0  ;;  %919 = vmatpush3.bf16.msra.mxu0 %v1019_v13  ;;  %v822_v13 = vld [vmem:[%s1426_s10] ss:$0 sm:$0xff]  ;;  %s1190_s10 = scalar_lea.vmem %s780_s30, 128 }
  0x64   :  { %920 = vmatprep.subr.bf16.mxu0 %v1229_v0  ;;  %p1191_p7 = scmp.ne.s32.totalorder %s780_s30, %s1190_s10  ;;  %p1196_p9 = scmp.lt.s32.totalorder %s1190_s10, %s1190_s10 }
  0x66   :  { %905 = vmatpush3.bf16.msra.mxu1 %v1014_v8  ;;  %p1197_p10 = por %p1196_p9, %p1195_p8 }
  0x67   :  { %906 = vmatprep.subr.bf16.mxu1 %v1229_v0  ;;  %921 = vmatpush3.bf16.msra.mxu0 %v1020_v14 }
  0x68   :  { %922 = vmatprep.subr.bf16.mxu0 %v1229_v0  ;;  %p1198_p11 = pnand %p1197_p10, %p1191_p7 }
  0x6a   :  { %907 = vmatpush3.bf16.msra.mxu1 %v1015_v9 }
  0x6b   :  { %908 = vmatprep.subr.bf16.mxu1 %v1229_v0  ;;  %923 = vmatpush3.bf16.msra.mxu0 %v1021_v15 }
  0x6c   :  { %924 = vmatprep.subr.bf16.mxu0 %v1229_v0 }
  0x6e   :  { %909 = vmatpush3.bf16.msra.mxu1 %v1016_v10 }
  0x6f   :  { %910 = vmatprep.subr.bf16.mxu1 %v1229_v0  ;;  %925 = vmatpush3.bf16.msra.mxu0 %v1022_v16 }
  0x70   :  { %926 = vmatprep.subr.bf16.mxu0 %v1229_v0 }
  0x72   :  { %911 = vmatpush3.bf16.msra.mxu1 %v1017_v11  ;;  %v1048_v11 = vld [vmem:[#allocation13 + $0x8] sm:$0xff]  }
  0x73   :  { %936 = vmatprep.subr.bf16.mxu1 %v1229_v0  ;;  %927 = vmatpush3.bf16.msra.mxu0 %v1023_v17 }
  0x74   :  { %928 = vmatprep.subr.bf16.mxu0 %v1229_v0 }
  0x77   :  { %929 = vmatpush3.bf16.msra.mxu0 %v1024_v26 }
  0x78   :  { %930 = vmatprep.subr.bf16.mxu0 %v1229_v0 }
  0x7b   :  { %931 = vmatpush3.bf16.msra.mxu0 %v1025_v27 }
  0x7c   :  { %956 = vmatprep.subr.bf16.mxu0 %v1229_v0 }
 0x11d   :  { %v201_v19 = vpop.f32.mrf.mxu0 }
 0x11e   :  { %v202_v20 = vadd.f32 %v791_v18, %v201_v19 }
 0x11f   :  { %v894_v21 = vpop.f32.mrf.mxu0 }
 0x120   :  { %v207_v22 = vmax.f32 %v202_v20, 0.0  ;;  %v831_v21 = vld [vmem:[%s1428_s12] ss:$0 sm:$0xff] }
 0x121   :  { %v204_v23 = vpop.f32.mrf.mxu0 }
 0x122   :  { %v208_v24 = vpack.c.bf16 %v207_v22, %v207_v22 }
 0x123   :  { %v895_v25 = vpop.f32.mrf.mxu0 }
 0x124   :  { %913 = vmatmul.mubr.bf16.vlgmr.msra.gmra.mxu1 %v208_v24 }
 0x125   :  { %952 = vmatprep.mubr.msk.bf16.mxu1 %vm1230_vm0, %v1229_v0  ;;  %937 = vmatpush3.bf16.msra.mxu1 %v1026_v28 }
 0x126   :  { %938 = vmatprep.subr.bf16.mxu1 %v1229_v0 }
 0x129   :  { %939 = vmatpush3.bf16.msra.mxu1 %v1027_v29 }
 0x12a   :  { %940 = vmatprep.subr.bf16.mxu1 %v1229_v0 }
 0x12d   :  { %941 = vmatpush3.bf16.msra.mxu1 %v1028_v30 }
 0x12e   :  { %942 = vmatprep.subr.bf16.mxu1 %v1229_v0 }
 0x131   :  { %943 = vmatpush3.bf16.msra.mxu1 %v1029_v31 }
 0x132   :  { %944 = vmatprep.subr.bf16.mxu1 %v1229_v0 }
 0x135   :  { %945 = vmatpush3.bf16.msra.mxu1 %v1030_v32 }
 0x136   :  { %946 = vmatprep.subr.bf16.mxu1 %v1229_v0 }
 0x139   :  { %947 = vmatpush3.bf16.msra.mxu1 %v1031_v33 }
 0x13a   :  { %948 = vmatprep.subr.bf16.mxu1 %v1229_v0 }
 0x13d   :  { %949 = vmatpush3.bf16.msra.mxu1 %v1032_v42 }
 0x13e   :  { %950 = vmatprep.subr.bf16.mxu1 %v1229_v0 }
 0x141   :  { %951 = vmatpush3.bf16.msra.mxu1 %v1033_v43 }
 0x142   :  { %976 = vmatprep.subr.bf16.mxu1 %v1229_v0 }
 0x1e4   :  { %v314_v35 = vpop.f32.mrf.mxu1 }
 0x1e5   :  { %v315_v36 = vadd.f32 %v795_v34, %v314_v35 }
 0x1e6   :  { %v914_v37 = vpop.f32.mrf.mxu1 }
 0x1e7   :  { %v320_v38 = vmax.f32 %v315_v36, 0.0 }
 0x1e8   :  { %v317_v39 = vpop.f32.mrf.mxu1 }
 0x1e9   :  { %v321_v40 = vpack.c.bf16 %v320_v38, %v320_v38 }
 0x1ea   :  { %v915_v41 = vpop.f32.mrf.mxu1 }
 0x1eb   :  { %933 = vmatmul.mubr.bf16.vlgmr.msra.gmra.mxu0 %v321_v40 }
 0x1ec   :  { %972 = vmatprep.mubr.msk.bf16.mxu0 %vm1230_vm0, %v1229_v0  ;;  %957 = vmatpush3.bf16.msra.mxu0 %v1034_v44 }
 0x1ed   :  { %958 = vmatprep.subr.bf16.mxu0 %v1229_v0 }
 0x1f0   :  { %959 = vmatpush3.bf16.msra.mxu0 %v1035_v45 }
 0x1f1   :  { %960 = vmatprep.subr.bf16.mxu0 %v1229_v0 }
 0x1f4   :  { %961 = vmatpush3.bf16.msra.mxu0 %v1036_v46 }
 0x1f5   :  { %962 = vmatprep.subr.bf16.mxu0 %v1229_v0 }
 0x1f8   :  { %963 = vmatpush3.bf16.msra.mxu0 %v1037_v47 }
 0x1f9   :  { %964 = vmatprep.subr.bf16.mxu0 %v1229_v0 }
 0x1fc   :  { %965 = vmatpush3.bf16.msra.mxu0 %v1038_v48 }
 0x1fd   :  { %966 = vmatprep.subr.bf16.mxu0 %v1229_v0 }
 0x200   :  { %967 = vmatpush3.bf16.msra.mxu0 %v1039_v49 }
 0x201   :  { %968 = vmatprep.subr.bf16.mxu0 %v1229_v0 }
 0x204   :  { %969 = vmatpush3.bf16.msra.mxu0 %v1040_v58 }
 0x205   :  { %970 = vmatprep.subr.bf16.mxu0 %v1229_v0 }
 0x208   :  { %971 = vmatpush3.bf16.msra.mxu0 %v1041_v59 }
 0x2ab   :  { %v427_v51 = vpop.f32.mrf.mxu0 }
 0x2ac   :  { %v428_v52 = vadd.f32 %v804_v50, %v427_v51 }
 0x2ad   :  { %v934_v53 = vpop.f32.mrf.mxu0 }
 0x2ae   :  { %v433_v54 = vmax.f32 %v428_v52, 0.0 }
 0x2af   :  { %v430_v55 = vpop.f32.mrf.mxu0 }
 0x2b0   :  { %v434_v56 = vpack.c.bf16 %v433_v54, %v433_v54 }
 0x2b1   :  { %v935_v57 = vpop.f32.mrf.mxu0 }
 0x2b2   :  { %953 = vmatmul.mubr.bf16.vlgmr.msra.gmra.mxu1 %v434_v56 }
 0x2b3   :  { %992 = vmatprep.mubr.msk.bf16.mxu1 %vm1230_vm0, %v1229_v0  ;;  %977 = vmatpush3.bf16.msra.mxu1 %v1042_v60 }
 0x2b4   :  { %978 = vmatprep.subr.bf16.mxu1 %v1229_v0 }
 0x2b7   :  { %979 = vmatpush3.bf16.msra.mxu1 %v1043_v61 }
 0x2b8   :  { %980 = vmatprep.subr.bf16.mxu1 %v1229_v0 }
 0x2bb   :  { %981 = vmatpush3.bf16.msra.mxu1 %v1044_v62 }
 0x2bc   :  { %982 = vmatprep.subr.bf16.mxu1 %v1229_v0 }
 0x2bf   :  { %983 = vmatpush3.bf16.msra.mxu1 %v1045_v63 }
 0x2c0   :  { %984 = vmatprep.subr.bf16.mxu1 %v1229_v0 }
 0x2c3   :  { %985 = vmatpush3.bf16.msra.mxu1 %v1046_v1 }
 0x2c4   :  { %986 = vmatprep.subr.bf16.mxu1 %v1229_v0 }
 0x2c7   :  { %987 = vmatpush3.bf16.msra.mxu1 %v1047_v2 }
 0x2c8   :  { %988 = vmatprep.subr.bf16.mxu1 %v1229_v0 }
 0x2cb   :  { %989 = vmatpush3.bf16.msra.mxu1 %v1048_v11 }
 0x2cc   :  { %990 = vmatprep.subr.bf16.mxu1 %v1229_v0 }
 0x2cf   :  { %991 = vmatpush3.bf16.msra.mxu1 %v1049_v12 }
 0x372   :  { %v540_v4 = vpop.f32.mrf.mxu1 }
 0x373   :  { %v541_v5 = vadd.f32 %v813_v3, %v540_v4 }
 0x374   :  { %v954_v6 = vpop.f32.mrf.mxu1 }
 0x375   :  { %v546_v7 = vmax.f32 %v541_v5, 0.0 }
 0x376   :  { %v543_v8 = vpop.f32.mrf.mxu1 }
 0x377   :  { %v547_v9 = vpack.c.bf16 %v546_v7, %v546_v7 }
 0x378   :  { %v955_v10 = vpop.f32.mrf.mxu1 }
 0x379   :  { %973 = vmatmul.mubr.bf16.vlgmr.msra.gmra.mxu0 %v547_v9 }
 0x439   :  { %v653_v14 = vpop.f32.mrf.mxu0 }
 0x43a   :  { %v654_v15 = vadd.f32 %v822_v13, %v653_v14 }
 0x43b   :  { %v974_v16 = vpop.f32.mrf.mxu0 }
 0x43c   :  { %v659_v17 = vmax.f32 %v654_v15, 0.0 }
 0x43d   :  { %v656_v18 = vpop.f32.mrf.mxu0 }
 0x43e   :  { %v660_v19 = vpack.c.bf16 %v659_v17, %v659_v17 }
 0x43f   :  { %v975_v20 = vpop.f32.mrf.mxu0 }
 0x440   :  { %993 = vmatmul.mubr.bf16.vlgmr.msra.gmra.mxu1 %v660_v19 }
 0x500   :  { %v766_v0 = vpop.f32.mrf.mxu1 }
 0x501   :  { %v767_v22 = vadd.f32 %v831_v21, %v766_v0 }
 0x502   :  { %v994_v23 = vpop.f32.mrf.mxu1 }
 0x503   :  { %772 = vst [vmem:[#allocation14] sm:$0xff] %v767_v22 }
 0x504   :  { %v769_v24 = vpop.f32.mrf.mxu1 }
 0x505   :  { %1201 = shalt.err (!%p1198_p11)
}
 0x506   :  { %782 = dma.vmem_to_hbm [thread:$0]  %s780_s30, 128, %s1429_s13, [#allocation4]   ;;  %v995_v25 = vpop.f32.mrf.mxu1 }
 0x507   :  { %1218 = dma.done.wait [#allocation4], 128  }
 0x508   :  { %1219 = vsyncadd [#allocation4], 4294967168 }
 0x509   :  { %786 = vsyncpa [#allocation3], 1 }
 0x50a   :  { %787 = vsyncpa [#allocation6], 1 }
 0x50b   :  { %788 = vsyncpa [#allocation9], 1 }
 0x50c   :  { %789 = vsyncpa [#allocation12], 1 }
 0x50d   :  { %790 = vsyncpa [#allocation4], 1 }

</bundles_post_ra>
